<compile_context>
chip_gen: v5e
topology: v5e:2x2
jax: 0.10.0
libtpu: 0.0.40
codegen_flags: <defaults>
</compile_context>

<pallas_src>
import functools

import jax
import jax.numpy as jnp
import numpy as np
from jax import lax
from jax.experimental import pallas as pl
from jax.experimental.pallas import tpu as pltpu


# 3x3 neighbourhood offsets, ordered to match w.transpose(0, 2, 3, 1).reshape(...)
_OFFSETS = tuple((kh - 1, kw - 1) for kh in range(3) for kw in range(3))
_PAD = 128  # lane padding each side of the flattened image (>= W+1, 128-aligned)


def _residual_kernel(x_ref, w1_ref, s1_ref, b1_ref, w2_ref, s2_ref, b2_ref,
                     mask_ref, o_ref, *, H, W):
    HW = H * W
    x = x_ref[0]                                         # (C_in, HW), lane-dense

    def conv3x3(src, w_all):
        # src: (Cs, HW) activation plane(s).  Build the 9 shifted copies via
        # static lane slices of a zero-padded flat image; boundary (padding=1)
        # semantics come from precomputed 0/1 masks.  One block matmul per conv.
        n_ch = src.shape[0]
        zpad = jnp.zeros((n_ch, _PAD), jnp.float32)
        src_p = jnp.concatenate([zpad, src, zpad], axis=1)   # (Cs, HW + 2*_PAD)
        slabs = []
        for k, (dh, dw) in enumerate(_OFFSETS):
            s = dh * W + dw
            slab = src_p[:, _PAD + s:_PAD + s + HW]          # shifted copy (Cs, HW)
            m = mask_ref[pl.ds(k, 1), :]                     # (1, HW) validity mask
            slabs.append(slab * m)
        patches = jnp.concatenate(slabs, axis=0)             # (9*Cs, HW)
        return jnp.dot(w_all, patches, preferred_element_type=jnp.float32)

    # conv1 -> bn1 (folded affine) -> relu
    y = conv3x3(x, w1_ref[...])                              # (C_mid, HW)
    y = jnp.maximum(y * s1_ref[...] + b1_ref[...], 0.0)

    # conv2 -> bn2 (folded affine) -> + residual -> relu
    z = conv3x3(y, w2_ref[...])                              # (C_out, HW)
    z = z * s2_ref[...] + b2_ref[...]
    o_ref[0] = jnp.maximum(z + x, 0.0)                       # lane-dense store


def residual_cat_forward(x, params, *, eps=1e-5):
    """Forward of Residual_cat with use_1x1conv=False (num_channels == input_channels)."""
    B, C, H, W = x.shape
    w1, cb1 = params["conv1_w"], params["conv1_b"]
    w2, cb2 = params["conv2_w"], params["conv2_b"]

    C_mid, C_out = w1.shape[0], w2.shape[0]
    assert w1.shape == (C_mid, C, 3, 3) and w2.shape == (C_out, C_mid, 3, 3)
    assert C_out == C, "use_1x1conv=False path needs num_channels == input_channels"
    assert W + 1 <= _PAD
    HW = H * W

    # Fold conv bias + inference-mode BatchNorm into per-channel scale / bias.
    s1 = params["bn1_gamma"] * lax.rsqrt(params["bn1_var"] + eps)
    b1 = (cb1 - params["bn1_mean"]) * s1 + params["bn1_beta"]
    s2 = params["bn2_gamma"] * lax.rsqrt(params["bn2_var"] + eps)
    b2 = (cb2 - params["bn2_mean"]) * s2 + params["bn2_beta"]

    # Block conv weights: (Cout, Cin, 3, 3) -> (Cout, 9*Cin), offset-major columns.
    w1m = jnp.transpose(w1, (0, 2, 3, 1)).reshape(C_mid, 9 * C).astype(jnp.float32)
    w2m = jnp.transpose(w2, (0, 2, 3, 1)).reshape(C_out, 9 * C_mid).astype(jnp.float32)

    # 0/1 validity masks for the 9 shifted copies (zero-padding boundary handling).
    p = np.arange(HW)
    row, col = p // W, p % W
    masks = np.stack(
        [((row + dh >= 0) & (row + dh < H) & (col + dw >= 0) & (col + dw < W))
         .astype(np.float32) for (dh, dw) in _OFFSETS], axis=0)          # (9, HW)
    masks = jnp.asarray(masks)

    x_flat = x.reshape(B, C, HW).astype(jnp.float32)   # free reshape, lane-dense

    kernel = functools.partial(_residual_kernel, H=H, W=W)

    def full(shape):
        return pl.BlockSpec(shape, lambda b, _n=len(shape): (0,) * _n)

    out = pl.pallas_call(
        kernel,
        out_shape=jax.ShapeDtypeStruct((B, C_out, HW), jnp.float32),
        grid_spec=pltpu.PrefetchScalarGridSpec(
            num_scalar_prefetch=0,
            grid=(B,),
            in_specs=[
                pl.BlockSpec((1, C, HW), lambda b: (b, 0, 0)),     # x (per image)
                full((C_mid, 9 * C)),                              # conv1 block weight
                full((C_mid, 1)), full((C_mid, 1)),                # bn1 scale / bias
                full((C_out, 9 * C_mid)),                          # conv2 block weight
                full((C_out, 1)), full((C_out, 1)),                # bn2 scale / bias
                full((9, HW)),                                     # boundary masks
            ],
            out_specs=pl.BlockSpec((1, C_out, HW), lambda b: (b, 0, 0)),
        ),
        compiler_params=pltpu.CompilerParams(
            dimension_semantics=("parallel",),       # v7x: 2 TCs split the batch axis
            vmem_limit_bytes=32 * 1024 * 1024,       # tiny working set; safe on v5e-v7x
        ),
    )(x_flat, w1m,
      s1.reshape(C_mid, 1).astype(jnp.float32), b1.reshape(C_mid, 1).astype(jnp.float32),
      w2m,
      s2.reshape(C_out, 1).astype(jnp.float32), b2.reshape(C_out, 1).astype(jnp.float32),
      masks)

    return out.reshape(B, C_out, H, W)


def _reference(x, params, *, eps=1e-5):
    def conv(z, w, b):
        y = lax.conv_general_dilated(z, w, window_strides=(1, 1),
                                     padding=((1, 1), (1, 1)),
                                     dimension_numbers=("NCHW", "OIHW", "NCHW"))
        return y + b[None, :, None, None]

    def bn(z, g, be, rm, rv):
        s = (g * lax.rsqrt(rv + eps))[None, :, None, None]
        return (z - rm[None, :, None, None]) * s + be[None, :, None, None]

    y = conv(x, params["conv1_w"], params["conv1_b"])
    y = jnp.maximum(bn(y, params["bn1_gamma"], params["bn1_beta"],
                       params["bn1_mean"], params["bn1_var"]), 0.0)
    y = conv(y, params["conv2_w"], params["conv2_b"])
    y = bn(y, params["bn2_gamma"], params["bn2_beta"],
           params["bn2_mean"], params["bn2_var"])
    return jnp.maximum(y + x, 0.0)


if __name__ == "__main__":
    key = jax.random.PRNGKey(0)
    ks = jax.random.split(key, 13)
    B, C, H, W = 2, 4, 16, 16   # input_channels == num_channels, strides=1

    params = dict(
        conv1_w=jax.random.normal(ks[0], (C, C, 3, 3), jnp.float32) * 0.2,
        conv1_b=jax.random.normal(ks[1], (C,), jnp.float32) * 0.1,
        conv2_w=jax.random.normal(ks[2], (C, C, 3, 3), jnp.float32) * 0.2,
        conv2_b=jax.random.normal(ks[3], (C,), jnp.float32) * 0.1,
        bn1_gamma=1.0 + 0.1 * jax.random.normal(ks[4], (C,), jnp.float32),
        bn1_beta=0.1 * jax.random.normal(ks[5], (C,), jnp.float32),
        bn1_mean=0.1 * jax.random.normal(ks[6], (C,), jnp.float32),
        bn1_var=jax.random.uniform(ks[7], (C,), jnp.float32, 0.5, 1.5),
        bn2_gamma=1.0 + 0.1 * jax.random.normal(ks[8], (C,), jnp.float32),
        bn2_beta=0.1 * jax.random.normal(ks[9], (C,), jnp.float32),
        bn2_mean=0.1 * jax.random.normal(ks[10], (C,), jnp.float32),
        bn2_var=jax.random.uniform(ks[11], (C,), jnp.float32, 0.5, 1.5),
    )
    x = jax.random.normal(ks[12], (B, C, H, W), jnp.float32)

    y = jax.block_until_ready(residual_cat_forward(x, params))
    y_ref = jax.block_until_ready(_reference(x, params))

    err = float(jnp.max(jnp.abs(y - y_ref)))
    scale = float(jnp.max(jnp.abs(y_ref))) + 1e-6
    assert err / scale < 1e-2, f"mismatch vs reference: abs={err}, rel={err / scale}"

    print("KERNEL_OK")
</pallas_src>

<mosaic_0001>
module attributes {stable_mosaic.version = 11 : i64} {
  func.func @_residual_kernel(%arg0: i32, %arg1: memref<1x4x256xf32, #tpu.memory_space<vmem>>, %arg2: memref<4x36xf32, #tpu.memory_space<vmem>>, %arg3: memref<4x1xf32, #tpu.memory_space<vmem>>, %arg4: memref<4x1xf32, #tpu.memory_space<vmem>>, %arg5: memref<4x36xf32, #tpu.memory_space<vmem>>, %arg6: memref<4x1xf32, #tpu.memory_space<vmem>>, %arg7: memref<4x1xf32, #tpu.memory_space<vmem>>, %arg8: memref<9x256xf32, #tpu.memory_space<vmem>>, %arg9: memref<1x4x256xf32, #tpu.memory_space<vmem>>) attributes {dimension_semantics = [#tpu.dimension_semantics<parallel>], iteration_bounds = array<i64: 2>, scalar_prefetch = 0 : i64, scratch_operands = 0 : i64, tpu.core_type = #tpu.core_type<tc>, window_params = [{transform_indices = @transform_0, window_bounds = array<i64: 1, 4, 256>}, {pipeline_mode = #tpu.pipeline_mode<synchronous>, transform_indices = @transform_1, window_bounds = array<i64: 4, 36>}, {pipeline_mode = #tpu.pipeline_mode<synchronous>, transform_indices = @transform_2, window_bounds = array<i64: 4, 1>}, {pipeline_mode = #tpu.pipeline_mode<synchronous>, transform_indices = @transform_3, window_bounds = array<i64: 4, 1>}, {pipeline_mode = #tpu.pipeline_mode<synchronous>, transform_indices = @transform_4, window_bounds = array<i64: 4, 36>}, {pipeline_mode = #tpu.pipeline_mode<synchronous>, transform_indices = @transform_5, window_bounds = array<i64: 4, 1>}, {pipeline_mode = #tpu.pipeline_mode<synchronous>, transform_indices = @transform_6, window_bounds = array<i64: 4, 1>}, {pipeline_mode = #tpu.pipeline_mode<synchronous>, transform_indices = @transform_7, window_bounds = array<i64: 9, 256>}, {transform_indices = @transform_8, window_bounds = array<i64: 1, 4, 256>}]} {
    %c0 = arith.constant 0 : index
    %c0_0 = arith.constant 0 : index
    %c0_1 = arith.constant 0 : index
    %0 = vector.load %arg1[%c0, %c0_0, %c0_1] : memref<1x4x256xf32, #tpu.memory_space<vmem>>, vector<1x4x256xf32>
    %1 = vector.shape_cast %0 : vector<1x4x256xf32> to vector<4x256xf32>
    %c0_2 = arith.constant 0 : index
    %c0_3 = arith.constant 0 : index
    %2 = vector.load %arg2[%c0_2, %c0_3] : memref<4x36xf32, #tpu.memory_space<vmem>>, vector<4x36xf32>
    %cst = arith.constant 0.000000e+00 : f32
    %3 = vector.broadcast %cst : f32 to vector<4x128xf32>
    %4 = tpu.concatenate %3, %1, %3 in 1 : vector<4x128xf32>, vector<4x256xf32>, vector<4x128xf32> -> vector<4x512xf32>
    %5 = vector.extract_strided_slice %4 {offsets = [0, 111], sizes = [4, 256], strides = [1, 1]} : vector<4x512xf32> to vector<4x256xf32>
    %c0_4 = arith.constant 0 : index
    %c0_5 = arith.constant 0 : index
    %6 = vector.load %arg8[%c0_4, %c0_5] : memref<9x256xf32, #tpu.memory_space<vmem>>, vector<1x256xf32>
    %7 = vector.broadcast %6 : vector<1x256xf32> to vector<4x256xf32>
    %8 = arith.mulf %5, %7 : vector<4x256xf32>
    %9 = vector.extract_strided_slice %4 {offsets = [0, 112], sizes = [4, 256], strides = [1, 1]} : vector<4x512xf32> to vector<4x256xf32>
    %c1 = arith.constant 1 : index
    %c0_6 = arith.constant 0 : index
    %10 = vector.load %arg8[%c1, %c0_6] : memref<9x256xf32, #tpu.memory_space<vmem>>, vector<1x256xf32>
    %11 = vector.broadcast %10 : vector<1x256xf32> to vector<4x256xf32>
    %12 = arith.mulf %9, %11 : vector<4x256xf32>
    %13 = vector.extract_strided_slice %4 {offsets = [0, 113], sizes = [4, 256], strides = [1, 1]} : vector<4x512xf32> to vector<4x256xf32>
    %c2 = arith.constant 2 : index
    %c0_7 = arith.constant 0 : index
    %14 = vector.load %arg8[%c2, %c0_7] : memref<9x256xf32, #tpu.memory_space<vmem>>, vector<1x256xf32>
    %15 = vector.broadcast %14 : vector<1x256xf32> to vector<4x256xf32>
    %16 = arith.mulf %13, %15 : vector<4x256xf32>
    %17 = vector.extract_strided_slice %4 {offsets = [0, 127], sizes = [4, 256], strides = [1, 1]} : vector<4x512xf32> to vector<4x256xf32>
    %c3 = arith.constant 3 : index
    %c0_8 = arith.constant 0 : index
    %18 = vector.load %arg8[%c3, %c0_8] : memref<9x256xf32, #tpu.memory_space<vmem>>, vector<1x256xf32>
    %19 = vector.broadcast %18 : vector<1x256xf32> to vector<4x256xf32>
    %20 = arith.mulf %17, %19 : vector<4x256xf32>
    %21 = vector.extract_strided_slice %4 {offsets = [0, 128], sizes = [4, 256], strides = [1, 1]} : vector<4x512xf32> to vector<4x256xf32>
    %c4 = arith.constant 4 : index
    %c0_9 = arith.constant 0 : index
    %22 = vector.load %arg8[%c4, %c0_9] : memref<9x256xf32, #tpu.memory_space<vmem>>, vector<1x256xf32>
    %23 = vector.broadcast %22 : vector<1x256xf32> to vector<4x256xf32>
    %24 = arith.mulf %21, %23 : vector<4x256xf32>
    %25 = vector.extract_strided_slice %4 {offsets = [0, 129], sizes = [4, 256], strides = [1, 1]} : vector<4x512xf32> to vector<4x256xf32>
    %c5 = arith.constant 5 : index
    %c0_10 = arith.constant 0 : index
    %26 = vector.load %arg8[%c5, %c0_10] : memref<9x256xf32, #tpu.memory_space<vmem>>, vector<1x256xf32>
    %27 = vector.broadcast %26 : vector<1x256xf32> to vector<4x256xf32>
    %28 = arith.mulf %25, %27 : vector<4x256xf32>
    %29 = vector.extract_strided_slice %4 {offsets = [0, 143], sizes = [4, 256], strides = [1, 1]} : vector<4x512xf32> to vector<4x256xf32>
    %c6 = arith.constant 6 : index
    %c0_11 = arith.constant 0 : index
    %30 = vector.load %arg8[%c6, %c0_11] : memref<9x256xf32, #tpu.memory_space<vmem>>, vector<1x256xf32>
    %31 = vector.broadcast %30 : vector<1x256xf32> to vector<4x256xf32>
    %32 = arith.mulf %29, %31 : vector<4x256xf32>
    %33 = vector.extract_strided_slice %4 {offsets = [0, 144], sizes = [4, 256], strides = [1, 1]} : vector<4x512xf32> to vector<4x256xf32>
    %c7 = arith.constant 7 : index
    %c0_12 = arith.constant 0 : index
    %34 = vector.load %arg8[%c7, %c0_12] : memref<9x256xf32, #tpu.memory_space<vmem>>, vector<1x256xf32>
    %35 = vector.broadcast %34 : vector<1x256xf32> to vector<4x256xf32>
    %36 = arith.mulf %33, %35 : vector<4x256xf32>
    %37 = vector.extract_strided_slice %4 {offsets = [0, 145], sizes = [4, 256], strides = [1, 1]} : vector<4x512xf32> to vector<4x256xf32>
    %c8 = arith.constant 8 : index
    %c0_13 = arith.constant 0 : index
    %38 = vector.load %arg8[%c8, %c0_13] : memref<9x256xf32, #tpu.memory_space<vmem>>, vector<1x256xf32>
    %39 = vector.broadcast %38 : vector<1x256xf32> to vector<4x256xf32>
    %40 = arith.mulf %37, %39 : vector<4x256xf32>
    %41 = tpu.concatenate %8, %12, %16, %20, %24, %28, %32, %36, %40 in 0 : vector<4x256xf32>, vector<4x256xf32>, vector<4x256xf32>, vector<4x256xf32>, vector<4x256xf32>, vector<4x256xf32>, vector<4x256xf32>, vector<4x256xf32>, vector<4x256xf32> -> vector<36x256xf32>
    %cst_14 = arith.constant dense<0.000000e+00> : vector<4x256xf32>
    %42 = tpu.matmul %2, %41, %cst_14 {dimension_numbers = #tpu.dot_dimension_numbers<[1], [0], [0], [1], [0, 0, 1, 1], [], []>} : vector<4x36xf32>, vector<36x256xf32>, vector<4x256xf32> -> vector<4x256xf32>
    %c0_15 = arith.constant 0 : index
    %c0_16 = arith.constant 0 : index
    %43 = vector.load %arg3[%c0_15, %c0_16] : memref<4x1xf32, #tpu.memory_space<vmem>>, vector<4x1xf32>
    %44 = vector.broadcast %43 : vector<4x1xf32> to vector<4x256xf32>
    %45 = arith.mulf %42, %44 : vector<4x256xf32>
    %c0_17 = arith.constant 0 : index
    %c0_18 = arith.constant 0 : index
    %46 = vector.load %arg4[%c0_17, %c0_18] : memref<4x1xf32, #tpu.memory_space<vmem>>, vector<4x1xf32>
    %47 = vector.broadcast %46 : vector<4x1xf32> to vector<4x256xf32>
    %48 = arith.addf %45, %47 : vector<4x256xf32>
    %cst_19 = arith.constant 0.000000e+00 : f32
    %49 = vector.broadcast %cst_19 : f32 to vector<4x256xf32>
    %50 = arith.maximumf %48, %49 : vector<4x256xf32>
    %c0_20 = arith.constant 0 : index
    %c0_21 = arith.constant 0 : index
    %51 = vector.load %arg5[%c0_20, %c0_21] : memref<4x36xf32, #tpu.memory_space<vmem>>, vector<4x36xf32>
    %cst_22 = arith.constant 0.000000e+00 : f32
    %52 = vector.broadcast %cst_22 : f32 to vector<4x128xf32>
    %53 = tpu.concatenate %52, %50, %52 in 1 : vector<4x128xf32>, vector<4x256xf32>, vector<4x128xf32> -> vector<4x512xf32>
    %54 = vector.extract_strided_slice %53 {offsets = [0, 111], sizes = [4, 256], strides = [1, 1]} : vector<4x512xf32> to vector<4x256xf32>
    %c0_23 = arith.constant 0 : index
    %c0_24 = arith.constant 0 : index
    %55 = vector.load %arg8[%c0_23, %c0_24] : memref<9x256xf32, #tpu.memory_space<vmem>>, vector<1x256xf32>
    %56 = vector.broadcast %55 : vector<1x256xf32> to vector<4x256xf32>
    %57 = arith.mulf %54, %56 : vector<4x256xf32>
    %58 = vector.extract_strided_slice %53 {offsets = [0, 112], sizes = [4, 256], strides = [1, 1]} : vector<4x512xf32> to vector<4x256xf32>
    %c1_25 = arith.constant 1 : index
    %c0_26 = arith.constant 0 : index
    %59 = vector.load %arg8[%c1_25, %c0_26] : memref<9x256xf32, #tpu.memory_space<vmem>>, vector<1x256xf32>
    %60 = vector.broadcast %59 : vector<1x256xf32> to vector<4x256xf32>
    %61 = arith.mulf %58, %60 : vector<4x256xf32>
    %62 = vector.extract_strided_slice %53 {offsets = [0, 113], sizes = [4, 256], strides = [1, 1]} : vector<4x512xf32> to vector<4x256xf32>
    %c2_27 = arith.constant 2 : index
    %c0_28 = arith.constant 0 : index
    %63 = vector.load %arg8[%c2_27, %c0_28] : memref<9x256xf32, #tpu.memory_space<vmem>>, vector<1x256xf32>
    %64 = vector.broadcast %63 : vector<1x256xf32> to vector<4x256xf32>
    %65 = arith.mulf %62, %64 : vector<4x256xf32>
    %66 = vector.extract_strided_slice %53 {offsets = [0, 127], sizes = [4, 256], strides = [1, 1]} : vector<4x512xf32> to vector<4x256xf32>
    %c3_29 = arith.constant 3 : index
    %c0_30 = arith.constant 0 : index
    %67 = vector.load %arg8[%c3_29, %c0_30] : memref<9x256xf32, #tpu.memory_space<vmem>>, vector<1x256xf32>
    %68 = vector.broadcast %67 : vector<1x256xf32> to vector<4x256xf32>
    %69 = arith.mulf %66, %68 : vector<4x256xf32>
    %70 = vector.extract_strided_slice %53 {offsets = [0, 128], sizes = [4, 256], strides = [1, 1]} : vector<4x512xf32> to vector<4x256xf32>
    %c4_31 = arith.constant 4 : index
    %c0_32 = arith.constant 0 : index
    %71 = vector.load %arg8[%c4_31, %c0_32] : memref<9x256xf32, #tpu.memory_space<vmem>>, vector<1x256xf32>
    %72 = vector.broadcast %71 : vector<1x256xf32> to vector<4x256xf32>
    %73 = arith.mulf %70, %72 : vector<4x256xf32>
    %74 = vector.extract_strided_slice %53 {offsets = [0, 129], sizes = [4, 256], strides = [1, 1]} : vector<4x512xf32> to vector<4x256xf32>
    %c5_33 = arith.constant 5 : index
    %c0_34 = arith.constant 0 : index
    %75 = vector.load %arg8[%c5_33, %c0_34] : memref<9x256xf32, #tpu.memory_space<vmem>>, vector<1x256xf32>
    %76 = vector.broadcast %75 : vector<1x256xf32> to vector<4x256xf32>
    %77 = arith.mulf %74, %76 : vector<4x256xf32>
    %78 = vector.extract_strided_slice %53 {offsets = [0, 143], sizes = [4, 256], strides = [1, 1]} : vector<4x512xf32> to vector<4x256xf32>
    %c6_35 = arith.constant 6 : index
    %c0_36 = arith.constant 0 : index
    %79 = vector.load %arg8[%c6_35, %c0_36] : memref<9x256xf32, #tpu.memory_space<vmem>>, vector<1x256xf32>
    %80 = vector.broadcast %79 : vector<1x256xf32> to vector<4x256xf32>
    %81 = arith.mulf %78, %80 : vector<4x256xf32>
    %82 = vector.extract_strided_slice %53 {offsets = [0, 144], sizes = [4, 256], strides = [1, 1]} : vector<4x512xf32> to vector<4x256xf32>
    %c7_37 = arith.constant 7 : index
    %c0_38 = arith.constant 0 : index
    %83 = vector.load %arg8[%c7_37, %c0_38] : memref<9x256xf32, #tpu.memory_space<vmem>>, vector<1x256xf32>
    %84 = vector.broadcast %83 : vector<1x256xf32> to vector<4x256xf32>
    %85 = arith.mulf %82, %84 : vector<4x256xf32>
    %86 = vector.extract_strided_slice %53 {offsets = [0, 145], sizes = [4, 256], strides = [1, 1]} : vector<4x512xf32> to vector<4x256xf32>
    %c8_39 = arith.constant 8 : index
    %c0_40 = arith.constant 0 : index
    %87 = vector.load %arg8[%c8_39, %c0_40] : memref<9x256xf32, #tpu.memory_space<vmem>>, vector<1x256xf32>
    %88 = vector.broadcast %87 : vector<1x256xf32> to vector<4x256xf32>
    %89 = arith.mulf %86, %88 : vector<4x256xf32>
    %90 = tpu.concatenate %57, %61, %65, %69, %73, %77, %81, %85, %89 in 0 : vector<4x256xf32>, vector<4x256xf32>, vector<4x256xf32>, vector<4x256xf32>, vector<4x256xf32>, vector<4x256xf32>, vector<4x256xf32>, vector<4x256xf32>, vector<4x256xf32> -> vector<36x256xf32>
    %cst_41 = arith.constant dense<0.000000e+00> : vector<4x256xf32>
    %91 = tpu.matmul %51, %90, %cst_41 {dimension_numbers = #tpu.dot_dimension_numbers<[1], [0], [0], [1], [0, 0, 1, 1], [], []>} : vector<4x36xf32>, vector<36x256xf32>, vector<4x256xf32> -> vector<4x256xf32>
    %c0_42 = arith.constant 0 : index
    %c0_43 = arith.constant 0 : index
    %92 = vector.load %arg6[%c0_42, %c0_43] : memref<4x1xf32, #tpu.memory_space<vmem>>, vector<4x1xf32>
    %93 = vector.broadcast %92 : vector<4x1xf32> to vector<4x256xf32>
    %94 = arith.mulf %91, %93 : vector<4x256xf32>
    %c0_44 = arith.constant 0 : index
    %c0_45 = arith.constant 0 : index
    %95 = vector.load %arg7[%c0_44, %c0_45] : memref<4x1xf32, #tpu.memory_space<vmem>>, vector<4x1xf32>
    %96 = vector.broadcast %95 : vector<4x1xf32> to vector<4x256xf32>
    %97 = arith.addf %94, %96 : vector<4x256xf32>
    %98 = arith.addf %97, %1 : vector<4x256xf32>
    %cst_46 = arith.constant 0.000000e+00 : f32
    %99 = vector.broadcast %cst_46 : f32 to vector<4x256xf32>
    %100 = arith.maximumf %98, %99 : vector<4x256xf32>
    %c0_47 = arith.constant 0 : index
    %c0_48 = arith.constant 0 : index
    %c0_49 = arith.constant 0 : index
    %101 = vector.load %arg9[%c0_47, %c0_48, %c0_49] : memref<1x4x256xf32, #tpu.memory_space<vmem>>, vector<1x4x256xf32>
    %102 = vector.shape_cast %101 : vector<1x4x256xf32> to vector<4x256xf32>
    %103 = vector.shape_cast %100 : vector<4x256xf32> to vector<1x4x256xf32>
    tpu.vector_store %arg9[%c0_47, %c0_48, %c0_49], %103 {strides = array<i32>} : memref<1x4x256xf32, #tpu.memory_space<vmem>>, vector<1x4x256xf32>,
    return
  }
  func.func @transform_0(%arg0: i32) -> (i32, i32, i32) {
    %c0_i32 = arith.constant 0 : i32
    %c0_i32_0 = arith.constant 0 : i32
    %c0_i32_1 = arith.constant 0 : i32
    return %arg0, %c0_i32, %c0_i32_0 : i32, i32, i32
  }
  func.func @transform_1(%arg0: i32) -> (i32, i32) {
    %c0_i32 = arith.constant 0 : i32
    %c0_i32_0 = arith.constant 0 : i32
    %c0_i32_1 = arith.constant 0 : i32
    return %c0_i32, %c0_i32_0 : i32, i32
  }
  func.func @transform_2(%arg0: i32) -> (i32, i32) {
    %c0_i32 = arith.constant 0 : i32
    %c0_i32_0 = arith.constant 0 : i32
    %c0_i32_1 = arith.constant 0 : i32
    return %c0_i32, %c0_i32_0 : i32, i32
  }
  func.func @transform_3(%arg0: i32) -> (i32, i32) {
    %c0_i32 = arith.constant 0 : i32
    %c0_i32_0 = arith.constant 0 : i32
    %c0_i32_1 = arith.constant 0 : i32
    return %c0_i32, %c0_i32_0 : i32, i32
  }
  func.func @transform_4(%arg0: i32) -> (i32, i32) {
    %c0_i32 = arith.constant 0 : i32
    %c0_i32_0 = arith.constant 0 : i32
    %c0_i32_1 = arith.constant 0 : i32
    return %c0_i32, %c0_i32_0 : i32, i32
  }
  func.func @transform_5(%arg0: i32) -> (i32, i32) {
    %c0_i32 = arith.constant 0 : i32
    %c0_i32_0 = arith.constant 0 : i32
    %c0_i32_1 = arith.constant 0 : i32
    return %c0_i32, %c0_i32_0 : i32, i32
  }
  func.func @transform_6(%arg0: i32) -> (i32, i32) {
    %c0_i32 = arith.constant 0 : i32
    %c0_i32_0 = arith.constant 0 : i32
    %c0_i32_1 = arith.constant 0 : i32
    return %c0_i32, %c0_i32_0 : i32, i32
  }
  func.func @transform_7(%arg0: i32) -> (i32, i32) {
    %c0_i32 = arith.constant 0 : i32
    %c0_i32_0 = arith.constant 0 : i32
    %c0_i32_1 = arith.constant 0 : i32
    return %c0_i32, %c0_i32_0 : i32, i32
  }
  func.func @transform_8(%arg0: i32) -> (i32, i32, i32) {
    %c0_i32 = arith.constant 0 : i32
    %c0_i32_0 = arith.constant 0 : i32
    %c0_i32_1 = arith.constant 0 : i32
    return %arg0, %c0_i32, %c0_i32_0 : i32, i32, i32
  }
}

</mosaic_0001>

<bundles_post_ra>
// kernel: tpu_custom_call.1
= control target key start
LH: loop header
LB: loop body
LE: loop exit
PB: predicated region body
PF: predicated region fallthrough
CT: control target
= control target key end

     0   :  { %s2016_s0 = inlined_call_operand.hbm [shape: f32[2,4,256], index: 0, kind: input, shape index: {}]   ;;  %s2017_s1 = inlined_call_operand.vmem [shape: f32[4,36], index: 1, kind: input, shape index: {}]   ;;  %s2018_s2 = inlined_call_operand.vmem [shape: f32[4,1], index: 2, kind: input, shape index: {}]   ;;  %s2019_s3 = inlined_call_operand.vmem [shape: f32[4,1], index: 3, kind: input, shape index: {}]   ;;  %s2020_s4 = inlined_call_operand.vmem [shape: f32[4,36], index: 4, kind: input, shape index: {}]   ;;  %s2021_s5 = inlined_call_operand.vmem [shape: f32[4,1], index: 5, kind: input, shape index: {}]   ;;  %s2022_s6 = inlined_call_operand.vmem [shape: f32[4,1], index: 6, kind: input, shape index: {}]   ;;  %s2023_s7 = inlined_call_operand.hbm [shape: f32[9,256], index: 7, kind: input, shape index: {}]   ;;  %s2024_s8 = inlined_call_operand.hbm [shape: f32[2,4,256], index: 8, kind: output, shape index: {}]  }
   0x1   :  { %2025 = sst [smem:[#allocation12_spill]] %s2023_s7 }
   0x2   :  { %13 = vsyncpa [#allocation3], 0 }
   0x3   :  { %15 = vsyncpa [#allocation3 + $0x1], 0 }
   0x4   :  { %16 = vsyncpa [#allocation6], 0 }
   0x5   :  { %17 = vsyncpa [#allocation4], 0 }
   0x6   :  { %19 = vsyncpa [#allocation4 + $0x1], 0  ;;  %s1537_s27 = smov 0   ;;  %s1539_s28 = smov 0  }
   0x7   :  { %s1541_s29 = smov 0   ;;  %s1543_s30 = smov 0  }
   0x8 LB: > { %s2026_s7 = sld [smem:[#allocation12_spill]]  ;;  %s1561_s12 = sadd.s32 4294967295, %s1473_s30   ;;  %s1473_s30 = sphi %s1543_s30, %s2038_s30   ;;  %s1469_s29 = sphi %s1541_s29, %s2037_s29   ;;  %s1465_s28 = sphi %s1539_s28, %s2036_s28   ;;  %s1461_s27 = sphi %s1537_s27, %s2035_s27  }
   0x9   : > { %p1113_p0 = scmp.ge.s32.totalorder %s1473_s30, 1  ;;  %p46_p1 = scmp.eq.s32.totalorder %s1561_s12, 0 }
   0xa   : > { %p229_p2 = scmp.lt.s32.totalorder %s1473_s30, 3  ;;  %s1475_s14 = smov [#allocation5]  }
   0xb   : > { %s260_s15 = sshll.u32 %s1475_s14, 4  ;;  %s1476_s16 = smov 256   ;;  %s261_s15 = int_to_ptr.vmem [resolvable:$true] %s260_s15 }
   0xc   : > { %p1566_p3 = pnand %p1113_p0, %p229_p2  ;;  %s1477_s17 = smov 16  }
   0xd   : > { %s1112_s18 = sadd.s32 4294967294, %s1473_s30   ;;  %s1577_s19 = sadd.s32 1, %s1473_s30  }
   0xe   : > { %s258_s11 = sshll.u32 %s2026_s7, 4  ;;  %p1146_p4 = pneg %p1566_p3  ;;  %s259_s11 = int_to_ptr.hbm [resolvable:$true] %s258_s11 }
   0xf   : > { %s32_s20 = sadd.s32 1, %s1469_s29  ;;  %s29_s21 = ssub.s32 %s1473_s30, %s1577_s19 }
  0x10   : > { %p1147_p6 = pnand %p1146_p4, %p46_p1  ;;  %p39_p7 = scmp.ne.s32.totalorder %s1469_s29, %s1465_s28 }
  0x11   : > { %p30_p8 = scmp.eq.s32.totalorder %s29_s21, 0  ;;  %p40_p9 = scmp.eq.s32.totalorder %s1473_s30, 0 }
  0x12   : > { %1149 = dma.hbm_to_vmem [thread:$0]  (!%p1147_p6), %s259_s11, 512, %s261_s15, [#allocation6], %s1476_s16, %s1476_s16, %s1477_s17  }
  0x13   : > { %p45_p10 = scmp.ne.s32.totalorder %s1465_s28, %s1461_s27  ;;  %p216_p11 = scmp.eq.s32.totalorder %s1561_s12, 1 }
  0x14   : > { %s1589_s22 = scalar_select %p30_p8, %s1469_s29, %s32_s20  }
  0x15   : > { %p1593_p12 = por %p46_p1, %p45_p10  ;;  %p1597_p13 = por %p216_p11, %p39_p7 }
  0x16   : > { %2028 = sst [smem:[#allocation11_spill]] %s1589_s22  ;;  %p222_p0 = scmp.eq.s32.totalorder %s1112_s18, 1 }
  0x17   : > { %p41_p2 = por %p40_p9, %p39_p7  ;;  %s274_s25 = sand.u32 1, %s1469_s29  }
  0x18   : > { %p1602_p4 = por %p222_p0, %p45_p10  ;;  %p1159_p6 = scmp.lt.s32.totalorder %s1473_s30, 2 }
  0x19   : > { %s1116_s9 = sshll.u32 %s274_s25, 3  ;;  %s1136_s10 = sshll.u32 %s1473_s30, 3 }
  0x1a   : > { %s283_s15 = scalar_lea.hbm %s2016_s0, %s1136_s10  ;;  %s278_s17 = scalar_lea.vmem [#allocation2], %s1116_s9 }
  0x1b   : > { %s285_s16 = sshll.u32 %s283_s15, 4  ;;  %s287_s20 = sshll.u32 %s278_s17, 4  ;;  %s286_s16 = int_to_ptr.hbm [resolvable:$true] %s285_s16  ;;  %s288_s20 = int_to_ptr.vmem [resolvable:$true] %s287_s20 }
  0x1c   : > { %p1611_p8 = pnand %p1159_p6, %p41_p2  ;;  %s275_s21 = scalar_lea.sflag [#allocation3], %s274_s25 }
  0x1d   : > { %s1373_s7 = sshra.s32 %s286_s16, 4  ;;  %s1380_s9 = scalar_lea.hbm %s2016_s0, 16  ;;  %s1374_s7 = int_to_ptr.hbm [resolvable:$true] %s1373_s7 }
  0x1e   : > { %s1375_s22 = scalar_lea.hbm %s1374_s7, 8  ;;  %p1377_p9 = pneg %p1611_p8 }
  0x1f   : > { %p1376_p7 = scmp.ne.s32.totalorder %s1374_s7, %s1375_s22  ;;  %p1381_p0 = scmp.lt.s32.totalorder %s1374_s7, %s2016_s0 }
  0x20   : > { %p1382_p2 = scmp.lt.s32.totalorder %s1380_s9, %s1375_s22 }
  0x21   : > { %p1378_p10 = pnand %p1377_p9, %p1376_p7 }
  0x22   : > { %p1383_p6 = por %p1382_p2, %p1381_p0 }
  0x23   : > { %p1379_p11 = pneg %p1378_p10 }
  0x25   : > { %p1384_p5 = pnand %p1383_p6, %p1379_p11 }
  0x27   : > { %1387 = shalt.err (!%p1384_p5)
}
  0x28   : > { %1153 = dma.hbm_to_vmem [thread:$0]  (!%p1611_p8), %s286_s16, 128, %s288_s20, %s275_s21  }
  0x29   : > { %296 = sbr.rel (%p1566_p3) target bundleno = 1004 (0x3ec), region = 52  ;;  %s1628_s25 = sand.u32 (!%p1566_p3), 1, %s1465_s28  }
  0x2a   : > { %s1120_s17 = sshll.u32 (!%p1566_p3), %s1628_s25, 3  ;;  %s299_s10 = scalar_lea.sflag (!%p1566_p3), [#allocation3], %s1628_s25 }
  0x2b   : > { %s1634_s7 = scalar_lea.vmem (!%p1566_p3), [#allocation2], %s1120_s17 }
  0x2e   : > { %1448 = dma.done.wait (%p1593_p12), %s299_s10, 128  }
  0x2f   : > { %1450 = vsyncadd (%p1593_p12), %s299_s10, 4294967168 }
  0x30   : > { %1452 = dma.done.wait (%p46_p1), [#allocation6], 512  }
  0x31   : > { %1454 = vsyncadd (%p46_p1), [#allocation6], 4294966784  ;;  %v477_v0 = vld [vmem:[#allocation5 + $0x10] ss:$8 sm:$0x3]  ;;  %s1478_s13 = smov 17  }
  0x32   : > { %v460_v1 = vld [vmem:[#allocation5 + $0x7] ss:$8 sm:$0x3]  ;;  %v479_v2 = vperm.slane %v477_v0, 0  ;;  %s1479_s22 = smov 16   ;;  %s1480_s16 = smov 1  }
  0x33   : > { %v462_v3 = vperm.slane %v460_v1, 0  ;;  %v426_v4 = vld [vmem:[#allocation5 + $0x5] ss:$8 sm:$0x3]  ;;  %v480_v6 = vperm.slane %v477_v0, 1  ;;  %v463_v7 = vperm.slane %v460_v1, 1 }
  0x34   : > { %481 = vrot.lane.b32.xlu1 %v479_v2, %s1478_s13  ;;  %v428_v5 = vperm.slane %v426_v4, 0  ;;  %v429_v8 = vperm.slane %v426_v4, 1  ;;  %v443_v9 = vld [vmem:[#allocation5 + $0x6] ss:$8 sm:$0x3]  ;;  %s1481_s23 = smov 15  }
  0x35   : > { %464 = vrot.lane.b32.xlu0 %v462_v3, %s1479_s22  ;;  %v446_v10 = vperm.slane %v443_v9, 1  ;;  %v445_v11 = vperm.slane %v443_v9, 0  ;;  %v400_v12 = vld [vmem:[#allocation5 + $0x3] ss:$8 sm:$0x3]  ;;  %s1482_s20 = smov 127  }
  0x36   : > { %430 = vrot.lane.b32.xlu2 %v428_v5, %s1480_s16  ;;  %v402_v13 = vperm.slane %v400_v12, 0  ;;  %v366_v14 = vld [vmem:[#allocation5 + $0x1] ss:$8 sm:$0x3]  ;;  %v403_v15 = vperm.slane %v400_v12, 1  ;;  %s1483_s18 = smov 112  }
  0x37   : > { %v368_v16 = vperm.slane %v366_v14, 0  ;;  %v369_v17 = vperm.slane %v366_v14, 1  ;;  %v383_v18 = vld [vmem:[#allocation5 + $0x2] ss:$8 sm:$0x3]  ;;  %s1484_s21 = smov 113  }
  0x38   : > { %v385_v19 = vperm.slane %v383_v18, 0  ;;  %v386_v20 = vperm.slane %v383_v18, 1  ;;  %v341_v21 = vld [vmem:[%s1634_s7] sm:$0xff]  ;;  %v1651_v22 = vld [vmem:[#allocation5 + $0x4] ss:$8 sm:$0x3] }
  0x39   : > { %344 = vst [vmem:[#allocation1] ss:$2 sm:$0xff] %v341_v21  ;;  %v419_v23 = vperm.slane %v1651_v22, 0  ;;  %v420_v24 = vperm.slane %v1651_v22, 1  ;;  %s1485_s11 = smov 111   ;;  %s1486_s9 = smov 94  }
  0x3a   : > { %v349_v29 = vld [vmem:[#allocation5] ss:$8 sm:$0x3]  ;;  %vm468_vm0 = vcmask 130048   ;;  %vm434_vm1 = vcmask 7168   ;;  %vm451_vm2 = vcmask 121856  }
  0x3b   : > { %v352_v30 = vperm.slane %v349_v29, 1  ;;  %v351_v32 = vperm.slane %v349_v29, 0  ;;  %s1487_s14 = smov 95   ;;  %s1488_s15 = smov 96   ;;  %vm408_vm3 = vcmask 1039360   ;;  %vm391_vm4 = vcmask 924672  }
  0x3c   : > { %483 = vrot.lane.b32.xlu1 %v480_v6, %s1478_s13  ;;  %s1489_s10 = smov 110   ;;  %vm485_vm5 = vcmask 138240   ;;  %vm374_vm6 = vcmask 916480   ;;  %s1490_s7 = smov 126   ;;  %vm579_vm7 = vcmask 785408   ;;  %vm597_vm8 = vcmask 777216  }
  0x3d   : > { %466 = vrot.lane.b32.xlu0 %v463_v7, %s1479_s22  ;;  %vm615_vm9 = vcmask 1043456   ;;  %vm519_vm10 = vcmask 1031168   ;;  %vm612_vm11 = vcmask 769024   ;;  %vm564_vm12 = vcmask 900096  }
  0x3e   : > { %432 = vrot.lane.b32.xlu2 %v429_v8, %s1480_s16  ;;  %vm357_vm13 = vcmask 908288   ;;  %vm688_vm14 = vcmask 293888   ;;  %s1016_s16 = scalar_lea.sflag [#allocation4], %s1628_s25 }
  0x40   : > { %v1655_v25 = vld.sshfl [vmem:[#allocation1] sm:$0xff pattern:$0x75316420]  ;;  %v1657_v26 = vld.sshfl [vmem:[#allocation1 + $0x8] sm:$0xff pattern:$0x75316420] }
  0x41   : > { %v423_v27 = vmul.f32 %v419_v23, %v1655_v25  ;;  %v424_v28 = vmul.f32 %v420_v24, %v1657_v26  ;;  %1000 = vst [vmem:[#allocation1] ss:$2 sm:$0xff] %v341_v21 }
  0x43   : > { %v1211_v31 = vpack.i.bf16 %v424_v28, %v423_v27 }
  0x44   : > { %449 = vrot.lane.b32.xlu1 %v446_v10, %s1481_s23 }
  0x45   : > { %447 = vrot.lane.b32.xlu0 %v445_v11, %s1481_s23 }
  0x46   : > { %404 = vrot.lane.b32.xlu2 %v402_v13, %s1482_s20 }
  0x4c   : > { %370 = vrot.lane.b32.xlu1 %v368_v16, %s1483_s18 }
  0x4d   : > { %406 = vrot.lane.b32.xlu0 %v403_v15, %s1482_s20 }
  0x4e   : > { %372 = vrot.lane.b32.xlu2 %v369_v17, %s1483_s18 }
  0x54   : > { %389 = vrot.lane.b32.xlu1 %v386_v20, %s1484_s21 }
  0x55   : > { %387 = vrot.lane.b32.xlu0 %v385_v19, %s1484_s21  ;;  %s340_s21 = scalar_lea.vmem [#allocation7], %s1120_s17  ;;  %s1423_s17 = scalar_lea.hbm %s2024_s8, 16 }
  0x56   : > { %s1029_s22 = sshll.u32 %s340_s21, 4  ;;  %s1030_s22 = int_to_ptr.vmem [resolvable:$true] %s1029_s22 }
  0x5c   : > { %355 = vrot.lane.b32.xlu1 %v352_v30, %s1485_s11 }
  0x5d   : > { %1212 = vrot.lane.b32.xlu0 %v1211_v31, %s1485_s11 }
  0x65   : > { %353 = vrot.lane.b32.xlu0 %v351_v32, %s1485_s11 }
  0x90   : > { %v1674_v36 = vpop.permute.xlu2 %430 }
  0x91   : > { %v439_v47 = vmul.f32 %v1674_v36, %v1655_v25 }
  0x93   : > { %v555_v56 = vrot.slane %v439_v47, 4 }
  0x98   : > { %v1684_v44 = vpop.permute.xlu2 %432 }
  0x99   : > { %v1689_v46 = vsel %vm434_vm1, %v1674_v36, %v1684_v44  ;;  %v441_v29 = vmul.f32 0.0, %v1684_v44 }
  0x9a   : > { %v440_v48 = vmul.f32 %v1689_v46, %v1657_v26 }
  0x9b   : > { %v557_v31 = vrot.slane %v441_v29, 4 }
  0x9c   : > { %v556_v57 = vrot.slane %v440_v48, 4 }
  0x9e   : > { %v1231_v61 = vpack.i.bf16 %v556_v57, %v555_v56 }
  0xa0   : > { %v405_v59 = vpop.permute.xlu2 %404 }
  0xa1   : > { %v413_v60 = vmul.f32 0.0, %v405_v59 }
  0xa3   : > { %v528_v2 = vrot.slane %v413_v60, 4 }
  0xa6   : > { %v1668_v33 = vpop.permute.xlu1 %481 }
  0xa7   : > { %v1670_v34 = vpop.permute.xlu0 %464  ;;  %v490_v35 = vmul.f32 %v1668_v33, %v1655_v25 }
  0xa8   : > { %v473_v37 = vmul.f32 %v1670_v34, %v1655_v25  ;;  %v1723_v10 = vpop.permute.xlu2 %372 }
  0xa9   : > { %606 = vrot.lane.b32.xlu2 %v490_v35, %s1486_s9  ;;  %v381_v12 = vmul.f32 %v1723_v10, %v1657_v26 }
  0xaa   : > { %v588_v43 = vrot.slane %v473_v37, 4 }
  0xab   : > { %v498_v16 = vrot.slane %v381_v12, 4 }
  0xae   : > { %v484_v38 = vpop.permute.xlu1 %483 }
  0xaf   : > { %v467_v39 = vpop.permute.xlu0 %466  ;;  %v492_v40 = vmul.f32 0.0, %v484_v38  ;;  %v1733_v14 = vsel %vm485_vm5, %v1668_v33, %v484_v38 }
  0xb0   : > { %v1680_v41 = vsel %vm468_vm0, %v1670_v34, %v467_v39  ;;  %v475_v17 = vmul.f32 0.0, %v467_v39  ;;  %v491_v18 = vmul.f32 %v1733_v14, %v1657_v26 }
  0xb1   : > { %v474_v42 = vmul.f32 %v1680_v41, %v1657_v26  ;;  %610 = vrot.lane.b32.xlu1 %v492_v40, %s1486_s9 }
  0xb2   : > { %v590_v21 = vrot.slane %v475_v17, 4 }
  0xb3   : > { %v589_v45 = vrot.slane %v474_v42, 4 }
  0xb5   : > { %v1226_v49 = vpack.i.bf16 %v589_v45, %v588_v43 }
  0xb6   : > { %v450_v50 = vpop.permute.xlu1 %449 }
  0xb7   : > { %v1695_v51 = vpop.permute.xlu0 %447  ;;  %v458_v52 = vmul.f32 0.0, %v450_v50 }
  0xb8   : > { %v1698_v53 = vsel %vm451_vm2, %v1695_v51, %v450_v50  ;;  %v456_v54 = vmul.f32 %v1695_v51, %v1655_v25 }
  0xb9   : > { %v457_v55 = vmul.f32 %v1698_v53, %v1657_v26  ;;  %1227 = vrot.lane.b32.xlu1 %v1226_v49, %s1487_s14  ;;  %577 = vrot.lane.b32.xlu0 %v458_v52, %s1488_s15 }
  0xbb   : > { %v1216_v58 = vpack.i.bf16 %v457_v55, %v456_v54 }
  0xbd   : > { %1217 = vrot.lane.b32.xlu2 %v1216_v58, %s1488_s15 }
  0xbe   : > { %v371_v63 = vpop.permute.xlu1 %370 }
  0xbf   : > { %v1707_v62 = vpop.permute.xlu0 %406  ;;  %v1737_v15 = vsel %vm374_vm6, %v371_v63, %v1723_v10  ;;  %v379_v19 = vmul.f32 0.0, %v371_v63 }
  0xc0   : > { %v1711_v0 = vsel %vm408_vm3, %v405_v59, %v1707_v62  ;;  %v380_v20 = vmul.f32 %v1737_v15, %v1655_v25  ;;  %v415_v32 = vmul.f32 %v1707_v62, %v1657_v26 }
  0xc1   : > { %v414_v1 = vmul.f32 %v1711_v0, %v1655_v25  ;;  %1232 = vrot.lane.b32.xlu1 %v1231_v61, %s1489_s10  ;;  %v496_v27 = vrot.slane %v379_v19, 4 }
  0xc2   : > { %v497_v28 = vrot.slane %v380_v20, 4  ;;  %v530_v35 = vrot.slane %v415_v32, 4 }
  0xc3   : > { %v529_v3 = vrot.slane %v414_v1, 4 }
  0xc4   : > { %v1241_v30 = vpack.i.bf16 %v497_v28, %v496_v27 }
  0xc5   : > { %v1236_v4 = vpack.i.bf16 %v529_v3, %v528_v2 }
  0xc6   : > { %v1716_v6 = vpop.permute.xlu1 %389 }
  0xc7   : > { %v388_v5 = vpop.permute.xlu0 %387  ;;  %v398_v9 = vmul.f32 %v1716_v6, %v1657_v26 }
  0xc8   : > { %v396_v7 = vmul.f32 0.0, %v388_v5  ;;  %v1719_v8 = vsel %vm391_vm4, %v388_v5, %v1716_v6 }
  0xc9   : > { %v397_v11 = vmul.f32 %v1719_v8, %v1655_v25  ;;  %517 = vrot.lane.b32.xlu0 %v398_v9, %s1490_s7  ;;  %1237 = vrot.lane.b32.xlu1 %v1236_v4, %s1483_s18 }
  0xcb   : > { %v1221_v13 = vpack.i.bf16 %v397_v11, %v396_v7 }
  0xcd   : > { %1222 = vrot.lane.b32.xlu2 %v1221_v13, %s1490_s7 }
  0xce   : > { %v1754_v38 = vpop.permute.xlu1 %355 }
  0xcf   : > { %v1213_v40 = vpop.permute.xlu0 %1212 }
  0xd0   : > { %v1214_v27 = vunpack.i.l.bf16 %v1213_v40 }
  0xd1   : > { %608 = vrot.lane.b32.xlu0 %v491_v18, %s1486_s9  ;;  %503 = vrot.lane.b32.xlu1 %v498_v16, %s1482_s20 }
  0xd5   : > { %595 = vrot.lane.b32.xlu2 %v590_v21, %s1487_s14  ;;  %v1215_v21 = vunpack.i.h.bf16 %v1213_v40 }
  0xd7   : > { %v1760_v44 = vpop.permute.xlu0 %353 }
  0xd9   : > { %1242 = vrot.lane.b32.xlu0 %v1241_v30, %s1482_s20 }
  0xdd   : > { %562 = vrot.lane.b32.xlu2 %v557_v31, %s1489_s10 }
  0xe5   : > { %535 = vrot.lane.b32.xlu2 %v530_v35, %s1483_s18  ;;  %v548_v35 = vsel %vm357_vm13, %v1214_v27, %v1215_v21 }
 0x103   : > { %v607_v37 = vpop.permute.xlu2 %606 }
 0x104   : > { %664 = vrot.lane.b32.xlu2 %v607_v37, %s1478_s13 }
 0x117   : > { %v1218_v39 = vpop.permute.xlu2 %1217 }
 0x118   : > { %v1220_v45 = vunpack.i.h.bf16 %v1218_v39  ;;  %v1219_v47 = vunpack.i.l.bf16 %v1218_v39 }
 0x11a   : > { %v580_v54 = vsel %vm579_vm7, %v1219_v47, %v1220_v45 }
 0x123   : > { %v1756_v42 = vpop.permute.xlu1 %610 }
 0x127   : > { %v1758_v43 = vpop.permute.xlu2 %1222 }
 0x128   : > { %v1225_v63 = vunpack.i.h.bf16 %v1758_v43  ;;  %v1224_v1 = vunpack.i.l.bf16 %v1758_v43 }
 0x12a   : > { %v520_v11 = vsel %vm519_vm10, %v1224_v1, %v1225_v63 }
 0x12b   : > { %v1228_v48 = vpop.permute.xlu1 %1227  ;;  %v1769_v59 = vpop.permute.xlu0 %577 }
 0x12c   : > { %v1230_v49 = vunpack.i.h.bf16 %v1228_v48  ;;  %v1229_v50 = vunpack.i.l.bf16 %v1228_v48  ;;  %v581_v48 = vsel %vm579_vm7, %v1220_v45, %v1769_v59  ;;  %v1819_v45 = vmul.f32 0.0, %v1760_v44 }
 0x12e   : > { %v598_v55 = vsel %vm597_vm8, %v1229_v50, %v1230_v49  ;;  %v625_v56 = vsel %vm615_vm9, %v1219_v47, %v1229_v50 }
 0x12f   : > { %v1762_v52 = vpop.permute.xlu2 %595  ;;  %v626_v57 = vsel %vm615_vm9, %v580_v54, %v598_v55  ;;  %v1810_v54 = vsel %vm357_vm13, %v1760_v44, %v1754_v38 }
 0x130   : > { %v1246_v58 = vpack.i.bf16 %v626_v57, %v625_v56  ;;  %v599_v39 = vsel %vm597_vm8, %v1230_v49, %v1762_v52 }
 0x131   : > { %v627_v50 = vsel %vm615_vm9, %v581_v48, %v599_v39 }
 0x132   : > { %1247 = vrot.lane.b32.xlu2 %v1246_v58, %s1478_s13 }
 0x133   : > { %v1233_v60 = vpop.permute.xlu1 %1232 }
 0x134   : > { %v1235_v18 = vunpack.i.h.bf16 %v1233_v60  ;;  %v1234_v19 = vunpack.i.l.bf16 %v1233_v60 }
 0x136   : > { %v565_v32 = vsel %vm564_vm12, %v1234_v19, %v1235_v18 }
 0x137   : > { %v1771_v61 = vpop.permute.xlu2 %562  ;;  %v623_v47 = vsel %vm615_vm9, %v548_v35, %v565_v32 }
 0x138   : > { %v566_v31 = vsel %vm564_vm12, %v1235_v18, %v1771_v61 }
 0x139   : > { %v624_v40 = vsel %vm615_vm9, %v1215_v21, %v566_v31 }
 0x13a   : > { %v1256_v56 = vpack.i.bf16 %v624_v40, %v623_v47 }
 0x13b   : > { %v518_v2 = vpop.permute.xlu0 %517  ;;  %v1775_v3 = vpop.permute.xlu1 %1237 }
 0x13c   : > { %v1240_v4 = vunpack.i.h.bf16 %v1775_v3  ;;  %v1239_v5 = vunpack.i.l.bf16 %v1775_v3  ;;  %v521_v12 = vsel %vm519_vm10, %v1225_v63, %v518_v2  ;;  %v363_v63 = vmul.f32 %v1810_v54, %v1655_v25 }
 0x13e   : > { %v537_v7 = vsel %vm374_vm6, %v1239_v5, %v1240_v4 }
 0x13f   : > { %v536_v9 = vpop.permute.xlu2 %535  ;;  %v619_v16 = vsel %vm615_vm9, %v520_v11, %v537_v7  ;;  %v364_v11 = vmul.f32 %v1754_v38, %v1657_v26  ;;  %v744_v26 = vld [vmem:[%s2019_s3] sm:$0xf] }
 0x140   : > { %v538_v13 = vsel %vm374_vm6, %v1240_v4, %v536_v9  ;;  %v621_v44 = vsel %vm615_vm9, %v518_v2, %v536_v9 }
 0x141   : > { %v620_v17 = vsel %vm615_vm9, %v521_v12, %v538_v13 }
 0x142   : > { %v1261_v20 = vpack.i.bf16 %v620_v17, %v619_v16 }
 0x143   : > { %v609_v28 = vpop.permute.xlu0 %608  ;;  %v504_v60 = vpop.permute.xlu1 %503 }
 0x144   : > { %1262 = vrot.lane.b32.xlu2 %v1261_v20, %s1478_s13  ;;  %v614_v29 = vsel %vm612_vm11, %v609_v28, %v1756_v42  ;;  %v613_v30 = vsel %vm612_vm11, %v607_v37, %v609_v28  ;;  %v622_v37 = vsel %vm615_vm9, %v1214_v27, %v1234_v19  ;;  %v618_v16 = vsel %vm615_vm9, %v364_v11, %v504_v60  ;;  %v736_v19 = vld [vmem:[%s2018_s2] sm:$0xf] }
 0x145   : > { %668 = vrot.lane.b32.xlu1 %v614_v29, %s1478_s13  ;;  %666 = vrot.lane.b32.xlu0 %v613_v30, %s1478_s13  ;;  %v1251_v49 = vpack.i.bf16 %v622_v37, %v627_v50  ;;  %v1491_v20 = vmov 0  }
 0x146   : > { %1277 = vset.pattern.permute.xlu0 %v1491_v20  ;;  %1276 = vset.pattern.permute.xlu2 %v1491_v20 }
 0x14b   : > { %v1812_v55 = vpop.permute.xlu0 %1242 }
 0x14c   : > { %v1245_v57 = vunpack.i.h.bf16 %v1812_v55  ;;  %v1244_v58 = vunpack.i.l.bf16 %v1812_v55  ;;  %739 = vperm.xlu2 %1276, %v736_v19   ;;  %v992_v55 = vld [vmem:[%s2022_s6] sm:$0xf] }
 0x14d   : > { %1257 = vrot.lane.b32.xlu1 %v1256_v56, %s1478_s13  ;;  %1252 = vrot.lane.b32.xlu0 %v1251_v49, %s1478_s13 }
 0x14e   : > { %v506_v4 = vsel %vm408_vm3, %v1245_v57, %v504_v60  ;;  %v505_v7 = vsel %vm408_vm3, %v1244_v58, %v1245_v57 }
 0x14f   : > { %v617_v12 = vsel %vm615_vm9, %v363_v63, %v506_v4  ;;  %v616_v13 = vsel %vm615_vm9, %v1819_v45, %v505_v7 }
 0x150   : > { %v1271_v17 = vpack.i.bf16 %v618_v16, %v617_v12  ;;  %v1266_v25 = vpack.i.bf16 %v616_v13, %v621_v44  ;;  %v342_v16 = vld [vmem:[%s2017_s1] sm:$0xf] }
 0x155   : > { %1272 = vrot.lane.b32.xlu1 %v1271_v17, %s1478_s13  ;;  %1267 = vrot.lane.b32.xlu0 %v1266_v25, %s1478_s13 }
 0x15d   : > { %747 = vperm.xlu0 %1277, %v744_v26  }
 0x15e   : > { %v665_v18 = vpop.permute.xlu2 %664 }
 0x18c   : > { %v1248_v2 = vpop.permute.xlu2 %1247 }
 0x18d   : > { %v1250_v9 = vunpack.i.h.bf16 %v1248_v2  ;;  %v1249_v21 = vunpack.i.l.bf16 %v1248_v2 }
 0x18f   : > { %v676_v31 = vsel %vm485_vm5, %v1249_v21, %v1250_v9 }
 0x19e   : > { %v1263_v32 = vpop.permute.xlu2 %1262 }
 0x19f   : > { %v1265_v35 = vunpack.i.h.bf16 %v1263_v32  ;;  %v1264_v39 = vunpack.i.l.bf16 %v1263_v32 }
 0x1a1   : > { %v672_v60 = vsel %vm485_vm5, %v1264_v39, %v1265_v35 }
 0x1a6   : > { %v740_v26 = vpop.permute.xlu2 %739 }
 0x1b7   : > { %v669_v27 = vpop.permute.xlu1 %668  ;;  %v667_v28 = vpop.permute.xlu0 %666 }
 0x1b8   : > { %v678_v29 = vsel %vm485_vm5, %v665_v18, %v667_v28  ;;  %v679_v30 = vsel %vm485_vm5, %v667_v28, %v669_v27 }
 0x1b9   : > { %1123 = vmatpush.msk.msra.mxu0 %vm615_vm9, %v678_v29  ;;  %1125 = vmatpush.msk.msra.mxu1 %vm615_vm9, %v679_v30 }
 0x1bb   : > { %708 = vmatpush.msra.mxu0 %v676_v31 }
 0x1bf   : > { %v1258_v40 = vpop.permute.xlu1 %1257  ;;  %v1253_v47 = vpop.permute.xlu0 %1252 }
 0x1c0   : > { %v1260_v37 = vunpack.i.h.bf16 %v1258_v40  ;;  %v1259_v48 = vunpack.i.l.bf16 %v1258_v40  ;;  %v1255_v50 = vunpack.i.h.bf16 %v1253_v47  ;;  %v1254_v56 = vunpack.i.l.bf16 %v1253_v47 }
 0x1c2   : > { %v674_v49 = vsel %vm485_vm5, %v1255_v50, %v1259_v48  ;;  %v677_v57 = vsel %vm485_vm5, %v1250_v9, %v1254_v56  ;;  %v675_v63 = vsel %vm485_vm5, %v1259_v48, %v1260_v37 }
 0x1c3   : > { %709 = vmatpush.msra.mxu0 %v674_v49  ;;  %728 = vmatpush.msra.mxu1 %v677_v57 }
 0x1c5   : > { %710 = vmatpush.msra.mxu0 %v672_v60  ;;  %729 = vmatpush.msra.mxu1 %v675_v63 }
 0x1c7   : > { %v1273_v4 = vpop.permute.xlu1 %1272  ;;  %v1268_v7 = vpop.permute.xlu0 %1267 }
 0x1c8   : > { %v1275_v11 = vunpack.i.h.bf16 %v1273_v4  ;;  %v1274_v12 = vunpack.i.l.bf16 %v1273_v4  ;;  %v1270_v13 = vunpack.i.h.bf16 %v1268_v7  ;;  %v1269_v44 = vunpack.i.l.bf16 %v1268_v7 }
 0x1ca   : > { %v670_v17 = vsel %vm485_vm5, %v1270_v13, %v1274_v12  ;;  %v673_v25 = vsel %vm485_vm5, %v1265_v35, %v1269_v44  ;;  %v671_v18 = vsel %vm485_vm5, %v1274_v12, %v1275_v11 }
 0x1cb   : > { %711 = vmatpush.msra.mxu0 %v670_v17  ;;  %730 = vmatpush.msra.mxu1 %v673_v25 }
 0x1cc   : > { %1124 = vmatmul.msk.f32.vlgmr.msra.gmra.mxu0 %vm688_vm14, %v342_v16 }
 0x1cd   : > { %731 = vmatpush.msra.mxu1 %v671_v18 }
 0x1ce   : > { %1126 = vmatmul.msk.f32.vlgmr.msra.gmra.mxu1 %vm688_vm14, %v342_v16 }
 0x1cf   : > { %v748_v20 = vpop.permute.xlu0 %747 }
 0x249   : > { %v713_v19 = vpop.f32.mrf.mxu0 }
 0x24a   : > { %v742_v2 = vmul.f32 %v740_v26, %v713_v19 }
 0x24b   : > { %v733_v9 = vpop.f32.mrf.mxu1 }
 0x24c   : > { %v750_v21 = vadd.f32 %v748_v20, %v742_v2  ;;  %v743_v27 = vmul.f32 %v740_v26, %v733_v9 }
 0x24e   : > { %v1859_v28 = vmax.f32 %v750_v21, 0.0  ;;  %v751_v29 = vadd.f32 %v748_v20, %v743_v27 }
 0x250   : > { %v1861_v30 = vmax.f32 %v751_v29, 0.0  ;;  %v771_v31 = vmul.f32 %v1859_v28, %v1668_v33  ;;  %v763_v35 = vmul.f32 %v1859_v28, %v419_v23  ;;  %v767_v22 = vmul.f32 %v1859_v28, %v1695_v51 }
 0x251   : > { %v757_v4 = vmul.f32 %v1859_v28, %v1737_v15 }
 0x252   : > { %859 = vrot.lane.b32.xlu1 %v771_v31, %s1486_s9  ;;  %v772_v32 = vmul.f32 %v1861_v30, %v1733_v14  ;;  %v764_v39 = vmul.f32 %v1861_v30, %v420_v24  ;;  %v770_v40 = vmul.f32 %v1861_v30, %v1680_v41  ;;  %v768_v33 = vmul.f32 %v1861_v30, %v1698_v53 }
 0x253   : > { %v769_v14 = vmul.f32 %v1859_v28, %v1670_v34  ;;  %v762_v37 = vmul.f32 %v1861_v30, %v1707_v62  ;;  %v761_v24 = vmul.f32 %v1859_v28, %v1711_v0  ;;  %v766_v53 = vmul.f32 %v1861_v30, %v1689_v46 }
 0x254   : > { %861 = vrot.lane.b32.xlu2 %v772_v32, %s1486_s9  ;;  %v1283_v47 = vpack.i.bf16 %v764_v39, %v763_v35  ;;  %v847_v23 = vrot.slane %v770_v40, 4  ;;  %v1278_v41 = vpack.i.bf16 %v768_v33, %v767_v22  ;;  %v765_v62 = vmul.f32 %v1859_v28, %v1674_v36 }
 0x255   : > { %v846_v48 = vrot.slane %v769_v14, 4  ;;  %v800_v50 = vrot.slane %v762_v37, 4  ;;  %v799_v56 = vrot.slane %v761_v24, 4  ;;  %v823_v49 = vrot.slane %v766_v53, 4 }
 0x256   : > { %1284 = vrot.lane.b32.xlu0 %v1283_v47, %s1485_s11  ;;  %v822_v0 = vrot.slane %v765_v62, 4  ;;  %v760_v57 = vmul.f32 %v1861_v30, %v1716_v6  ;;  %v759_v46 = vmul.f32 %v1859_v28, %v1719_v8  ;;  %v758_v63 = vmul.f32 %v1861_v30, %v1723_v10 }
 0x257   : > { %v1288_v34 = vpack.i.bf16 %v847_v23, %v846_v48  ;;  %v1303_v51 = vpack.i.bf16 %v800_v50, %v799_v56  ;;  %v775_v11 = vrot.slane %v757_v4, 4 }
 0x258   : > { %v1298_v60 = vpack.i.bf16 %v823_v49, %v822_v0  ;;  %v1293_v36 = vpack.i.bf16 %v760_v57, %v759_v46  ;;  %v776_v7 = vrot.slane %v758_v63, 4  ;;  %v756_v63 = vmul.f32 %v1861_v30, %v1754_v38 }
 0x25a   : > { %1279 = vrot.lane.b32.xlu1 %v1278_v41, %s1488_s15  ;;  %v1308_v12 = vpack.i.bf16 %v776_v7, %v775_v11  ;;  %s1137_s15 = sshll.u32 %s1561_s12, 3 }
 0x25b   : > { %s1027_s23 = scalar_lea.hbm %s2024_s8, %s1137_s15 }
 0x25c   : > { %1289 = vrot.lane.b32.xlu2 %v1288_v34, %s1487_s14  ;;  %s1031_s12 = sshll.u32 %s1027_s23, 4  ;;  %s1032_s12 = int_to_ptr.hbm [resolvable:$true] %s1031_s12 }
 0x25e   : > { %1304 = vrot.lane.b32.xlu0 %v1303_v51, %s1483_s18 }
 0x262   : > { %1299 = vrot.lane.b32.xlu1 %v1298_v60, %s1489_s10 }
 0x264   : > { %1294 = vrot.lane.b32.xlu2 %v1293_v36, %s1490_s7  ;;  %v755_v36 = vmul.f32 %v1859_v28, %v1810_v54 }
 0x26a   : > { %1309 = vrot.lane.b32.xlu1 %v1308_v12, %s1482_s20  ;;  %s1417_s20 = sshra.s32 %s1032_s12, 4  ;;  %s1418_s20 = int_to_ptr.hbm [resolvable:$true] %s1417_s20 }
 0x26b   : > { %s1419_s18 = scalar_lea.hbm %s1418_s20, 8  ;;  %p1424_p12 = scmp.lt.s32.totalorder %s1418_s20, %s2024_s8 }
 0x26c   : > { %p1420_p1 = scmp.ne.s32.totalorder %s1418_s20, %s1419_s18  ;;  %p1425_p8 = scmp.lt.s32.totalorder %s1423_s17, %s1419_s18 }
 0x26e   : > { %p1421_p3 = pnand %p1420_p1, %p1597_p13  ;;  %p1426_p7 = por %p1425_p8, %p1424_p12 }
 0x270   : > { %p1422_p5 = pneg %p1421_p3 }
 0x272   : > { %p1427_p9 = pnand %p1426_p7, %p1422_p5 }
 0x2ae   : > { %v862_v6 = vpop.permute.xlu2 %861 }
 0x2af   : > { %v864_v8 = vsel %vm612_vm11, %v862_v6, %v1756_v42 }
 0x2b0   : > { %917 = vrot.lane.b32.xlu0 %v864_v8, %s1478_s13 }
 0x2b6   : > { %v1290_v10 = vpop.permute.xlu2 %1289 }
 0x2b7   : > { %v1292_v16 = vunpack.i.h.bf16 %v1290_v10  ;;  %v1291_v15 = vunpack.i.l.bf16 %v1290_v10 }
 0x2b9   : > { %v853_v42 = vsel %vm597_vm8, %v1292_v16, %v1762_v52  ;;  %v852_v20 = vsel %vm597_vm8, %v1291_v15, %v1292_v16 }
 0x2be   : > { %v1295_v18 = vpop.permute.xlu2 %1294 }
 0x2bf   : > { %v1297_v21 = vunpack.i.h.bf16 %v1295_v18  ;;  %v1296_v32 = vunpack.i.l.bf16 %v1295_v18 }
 0x2c1   : > { %v792_v4 = vsel %vm519_vm10, %v1224_v1, %v1296_v32 }
 0x2c4   : > { %v860_v13 = vpop.permute.xlu1 %859 }
 0x2c5   : > { %913 = vrot.lane.b32.xlu2 %v860_v13, %s1478_s13  ;;  %v863_v25 = vsel %vm612_vm11, %v860_v13, %v862_v6 }
 0x2c8   : > { %v1285_v44 = vpop.permute.xlu0 %1284 }
 0x2c9   : > { %v1287_v47 = vunpack.i.h.bf16 %v1285_v44  ;;  %v1286_v33 = vunpack.i.l.bf16 %v1285_v44 }
 0x2cb   : > { %v816_v23 = vsel %vm357_vm13, %v1286_v33, %v1287_v47 }
 0x2cc   : > { %v1280_v17 = vpop.permute.xlu1 %1279 }
 0x2cd   : > { %v1282_v26 = vunpack.i.h.bf16 %v1280_v17  ;;  %v1281_v19 = vunpack.i.l.bf16 %v1280_v17  ;;  %915 = vrot.lane.b32.xlu2 %v863_v25, %s1478_s13 }
 0x2cf   : > { %v840_v2 = vsel %vm579_vm7, %v1282_v26, %v1769_v59  ;;  %v839_v9 = vsel %vm579_vm7, %v1281_v19, %v1282_v26  ;;  %v793_v59 = vsel %vm519_vm10, %v1296_v32, %v1297_v21  ;;  %v874_v51 = vsel %vm615_vm9, %v1281_v19, %v1291_v15 }
 0x2d0   : > { %v1305_v27 = vpop.permute.xlu0 %1304  ;;  %v875_v29 = vsel %vm615_vm9, %v839_v9, %v852_v20  ;;  %v876_v31 = vsel %vm615_vm9, %v840_v2, %v853_v42 }
 0x2d1   : > { %v1307_v35 = vunpack.i.h.bf16 %v1305_v27  ;;  %v1306_v39 = vunpack.i.l.bf16 %v1305_v27  ;;  %v1318_v40 = vpack.i.bf16 %v876_v31, %v875_v29 }
 0x2d3   : > { %v806_v52 = vsel %vm374_vm6, %v1306_v39, %v1307_v35  ;;  %1319 = vrot.lane.b32.xlu1 %v1318_v40, %s1478_s13  ;;  %v870_v50 = vsel %vm615_vm9, %v1297_v21, %v1307_v35  ;;  %v805_v57 = vsel %vm374_vm6, %v1239_v5, %v1306_v39  ;;  %v984_v5 = vld [vmem:[%s2021_s5] sm:$0xf] }
 0x2d4   : > { %v1300_v14 = vpop.permute.xlu1 %1299  ;;  %v869_v24 = vsel %vm615_vm9, %v793_v59, %v806_v52  ;;  %v868_v54 = vsel %vm615_vm9, %v792_v4, %v805_v57 }
 0x2d5   : > { %v1302_v37 = vunpack.i.h.bf16 %v1300_v14  ;;  %v1301_v22 = vunpack.i.l.bf16 %v1300_v14  ;;  %v1328_v0 = vpack.i.bf16 %v869_v24, %v874_v51  ;;  %v1002_v24 = vld.sshfl [vmem:[#allocation1 + $0x8] sm:$0xff pattern:$0x75316420] }
 0x2d7   : > { %v829_v41 = vsel %vm564_vm12, %v1302_v37, %v1771_v61  ;;  %v828_v48 = vsel %vm564_vm12, %v1301_v22, %v1302_v37  ;;  %v871_v53 = vsel %vm615_vm9, %v1286_v33, %v1301_v22 }
 0x2d8   : > { %v1313_v34 = vpack.i.bf16 %v871_v53, %v870_v50  ;;  %v872_v56 = vsel %vm615_vm9, %v816_v23, %v828_v48  ;;  %v873_v62 = vsel %vm615_vm9, %v1287_v47, %v829_v41  ;;  %v754_v47 = vld [vmem:[%s2020_s4] sm:$0xf] }
 0x2d9   : > { %v1323_v49 = vpack.i.bf16 %v873_v62, %v872_v56  ;;  %v1001_v53 = vld.sshfl [vmem:[#allocation1] sm:$0xff pattern:$0x75316420] }
 0x2da   : > { %1314 = vrot.lane.b32.xlu2 %v1313_v34, %s1478_s13 }
 0x2db   : > { %1324 = vrot.lane.b32.xlu0 %v1323_v49, %s1478_s13  ;;  %1329 = vrot.lane.b32.xlu1 %v1328_v0, %s1478_s13 }
 0x2dc   : > { %v1310_v61 = vpop.permute.xlu1 %1309 }
 0x2dd   : > { %v1312_v60 = vunpack.i.h.bf16 %v1310_v61  ;;  %v1311_v46 = vunpack.i.l.bf16 %v1310_v61 }
 0x2df   : > { %v781_v7 = vsel %vm408_vm3, %v1244_v58, %v1311_v46  ;;  %v782_v3 = vsel %vm408_vm3, %v1311_v46, %v1312_v60  ;;  %v867_v11 = vsel %vm615_vm9, %v756_v63, %v1312_v60 }
 0x2e0   : > { %v865_v38 = vsel %vm615_vm9, %v1819_v45, %v781_v7  ;;  %v866_v43 = vsel %vm615_vm9, %v755_v36, %v782_v3 }
 0x2e1   : > { %v1338_v1 = vpack.i.bf16 %v865_v38, %v868_v54  ;;  %v1333_v28 = vpack.i.bf16 %v867_v11, %v866_v43 }
 0x2e2   : > { %987 = vperm.xlu2 %1276, %v984_v5  }
 0x2e3   : > { %1339 = vrot.lane.b32.xlu1 %v1338_v1, %s1478_s13  ;;  %1334 = vrot.lane.b32.xlu0 %v1333_v28, %s1478_s13 }
 0x2eb   : > { %995 = vperm.xlu0 %1277, %v992_v55  }
 0x31f   : > { %v914_v58 = vpop.permute.xlu2 %913 }
 0x322   : > { %v918_v30 = vpop.permute.xlu0 %917 }
 0x327   : > { %v916_v12 = vpop.permute.xlu2 %915 }
 0x328   : > { %v927_v45 = vsel %vm485_vm5, %v914_v58, %v916_v12  ;;  %v928_v6 = vsel %vm485_vm5, %v916_v12, %v918_v30 }
 0x329   : > { %1127 = vmatpush.msk.msra.mxu2 %vm615_vm9, %v927_v45  ;;  %1129 = vmatpush.msk.msra.mxu3 %vm615_vm9, %v928_v6 }
 0x334   : > { %v1315_v16 = vpop.permute.xlu2 %1314 }
 0x335   : > { %v1317_v42 = vunpack.i.h.bf16 %v1315_v16  ;;  %v1316_v20 = vunpack.i.l.bf16 %v1315_v16 }
 0x33c   : > { %v988_v59 = vpop.permute.xlu2 %987 }
 0x345   : > { %v1320_v8 = vpop.permute.xlu1 %1319 }
 0x346   : > { %v1322_v10 = vunpack.i.h.bf16 %v1320_v8  ;;  %v1321_v13 = vunpack.i.l.bf16 %v1320_v8 }
 0x348   : > { %v926_v44 = vsel %vm485_vm5, %v1321_v13, %v1322_v10 }
 0x349   : > { %976 = vmatpush.msra.mxu3 %v926_v44 }
 0x34d   : > { %v1325_v15 = vpop.permute.xlu0 %1324  ;;  %v1330_v17 = vpop.permute.xlu1 %1329 }
 0x34e   : > { %v1327_v25 = vunpack.i.h.bf16 %v1325_v15  ;;  %v1326_v18 = vunpack.i.l.bf16 %v1325_v15  ;;  %v1332_v26 = vunpack.i.h.bf16 %v1330_v17  ;;  %v1331_v19 = vunpack.i.l.bf16 %v1330_v17 }
 0x350   : > { %v925_v2 = vsel %vm485_vm5, %v1331_v19, %v1321_v13  ;;  %v924_v9 = vsel %vm485_vm5, %v1326_v18, %v1327_v25  ;;  %v923_v21 = vsel %vm485_vm5, %v1317_v42, %v1326_v18  ;;  %v922_v27 = vsel %vm485_vm5, %v1332_v26, %v1316_v20 }
 0x351   : > { %956 = vmatpush.msra.mxu2 %v925_v2  ;;  %977 = vmatpush.msra.mxu3 %v924_v9 }
 0x353   : > { %957 = vmatpush.msra.mxu2 %v923_v21  ;;  %978 = vmatpush.msra.mxu3 %v922_v27 }
 0x355   : > { %v1340_v29 = vpop.permute.xlu1 %1339  ;;  %v1335_v31 = vpop.permute.xlu0 %1334 }
 0x356   : > { %v1342_v32 = vunpack.i.h.bf16 %v1340_v29  ;;  %v1341_v35 = vunpack.i.l.bf16 %v1340_v29  ;;  %v1337_v39 = vunpack.i.h.bf16 %v1335_v31  ;;  %v1336_v40 = vunpack.i.l.bf16 %v1335_v31 }
 0x358   : > { %v921_v33 = vsel %vm485_vm5, %v1341_v35, %v1332_v26  ;;  %v920_v52 = vsel %vm485_vm5, %v1336_v40, %v1337_v39  ;;  %v919_v14 = vsel %vm485_vm5, %v1342_v32, %v1336_v40 }
 0x359   : > { %958 = vmatpush.msra.mxu2 %v921_v33  ;;  %979 = vmatpush.msra.mxu3 %v920_v52 }
 0x35a   : > { %1130 = vmatmul.msk.f32.vlgmr.msra.gmra.mxu3 %vm688_vm14, %v754_v47 }
 0x35b   : > { %959 = vmatpush.msra.mxu2 %v919_v14 }
 0x35c   : > { %1128 = vmatmul.msk.f32.vlgmr.msra.gmra.mxu2 %vm688_vm14, %v754_v47 }
 0x35d   : > { %v996_v23 = vpop.permute.xlu0 %995 }
 0x3dd   : > { %v981_v37 = vpop.f32.mrf.mxu3 }
 0x3de   : > { %v991_v22 = vmul.f32 %v988_v59, %v981_v37 }
 0x3df   : > { %v961_v41 = vpop.f32.mrf.mxu2 }
 0x3e0   : > { %v999_v48 = vadd.f32 %v996_v23, %v991_v22  ;;  %v990_v50 = vmul.f32 %v988_v59, %v961_v41 }
 0x3e2   : > { %v1006_v34 = vadd.f32 %v1002_v24, %v999_v48  ;;  %v998_v56 = vadd.f32 %v996_v23, %v990_v50 }
 0x3e4   : > { %v1008_v62 = vmax.f32 %v1006_v34, 0.0  ;;  %v1005_v51 = vadd.f32 %v1001_v53, %v998_v56 }
 0x3e6   : > { %v1011_v49 = vrot.slane %v1008_v62, 4  ;;  %v1007_v0 = vmax.f32 %v1005_v51, 0.0 }
 0x3e8   : > { %v1012_v61 = vsel %vm615_vm9, %v1007_v0, %v1011_v49 }
 0x3e9   : > { %1014 = vst [vmem:[%s340_s21] sm:$0xff] %v1012_v61 }
 0x3ea   : > { %1430 = shalt.err (!%p1427_p9)
}
 0x3eb   : > { %1144 = dma.vmem_to_hbm [thread:$0]  (%p1597_p13), %s1030_s22, 128, %s1032_s12, %s1016_s16  }
 0x3ec PF: > { %s1043_s25 = sand.u32 1, %s1461_s27   ;;  %p2033_p10 = scmp.ge.s32.totalorder %s1473_s30, 2 }
 0x3ed   : > { %s1044_s15 = scalar_lea.sflag [#allocation4], %s1043_s25 }
 0x3ee   : > { %p1155_p11 = pnand %p2033_p10, %p1602_p4 }
 0x3f0   : > { %p1156_p0 = pneg %p1155_p11 }
 0x3f2   : > { %1456 = dma.done.wait (%p1156_p0), %s1044_s15, 128  }
 0x3f3   : > { %1458 = vsyncadd (%p1156_p0), %s1044_s15, 4294967168  ;;  %s2034_s10 = sld [smem:[#allocation11_spill]]  ;;  %p22_p2 = scmp.ge.s32.totalorder %s1577_s19, 4  }
 0x3f4   : > { %s2035_s27 = smov %s1465_s28  ;;  %s2036_s28 = smov %s1469_s29 }
 0x3f5   : > { %s2038_s30 = smov %s1577_s19  ;;  %24 = sbr.rel (!%p22_p2) target bundleno = 8 (0x8), region = 109 }
 0x3f9   : > { %s2037_s29 = smov %s2034_s10 }
 0x3fa   :  { %1050 = vsyncpa [#allocation3], 1 }
 0x3fb   :  { %1052 = vsyncpa [#allocation3 + $0x1], 1 }
 0x3fc   :  { %1053 = vsyncpa [#allocation6], 1 }
 0x3fd   :  { %1054 = vsyncpa [#allocation4], 1 }
 0x3fe   :  { %1056 = vsyncpa [#allocation4 + $0x1], 1 }

</bundles_post_ra>
